<compile_context>
chip_gen: v5e
topology: v5e:2x2
jax: 0.10.0
libtpu: 0.0.40
codegen_flags: <defaults>
</compile_context>

<pallas_src>
import jax
import jax.numpy as jnp
from jax.experimental import pallas as pl
from jax.experimental.pallas import tpu as pltpu

# ---------------------------------------------------------------------------
# Synthetic problem sizes (small, consistent with the module's forward).
# ---------------------------------------------------------------------------
B        = 2             # batch
NUM_WS   = 8             # w+ latents per sample
W_DIM    = 32            # latent dim (512 in real EG3D)
C_DIM    = 25            # camera conditioning: 16 (cam2world) + 9 (intrinsics)
C_PAD    = 32            # c padded to 32 sublanes for the wc matmul
HIDDEN   = 64
IMG_C, IMG_H, IMG_W = 3, 16, 16
IMG_FLAT = IMG_C * IMG_H * IMG_W          # 768 (lane-dense multiple of 128)
CLIP_DIM = 64             # synthetic CLIP embedding dim (2 models -> 128 lanes)

CLIP_MODELS        = ("ViT-B/32", "ViT-B/16")
CLIP_MODEL_WEIGHTS = (1.0, 0.5)
W_SUM              = float(sum(CLIP_MODEL_WEIGHTS))

N_HID  = 2 * HIDDEN                       # 128 (frozen | trainable)
N_CLIP = len(CLIP_MODELS) * CLIP_DIM      # 128


# ---------------------------------------------------------------------------
# Fused kernel: both synthesis branches + weighted directional CLIP loss.
# ---------------------------------------------------------------------------
def nadagan_kernel(w_ref,      # (B*NUM_WS, W_DIM)  f32
                   c_ref,      # (B, C_PAD)         f32  (zero-padded camera cond.)
                   w1_ref,     # (W_DIM, N_HID)     bf16 [w1_f | w1_t]
                   wc_ref,     # (C_PAD, N_HID)     bf16 [wc_f | wc_t ; 0-pad rows]
                   b1_ref,     # (1, N_HID)         f32  [b1_f | b1_t]
                   w2_ref,     # (N_HID, IMG_FLAT)  bf16 [w2_f ; w2_t]
                   b2_ref,     # (2, IMG_FLAT)      f32  [b2_f ; b2_t]
                   enc_ref,    # (IMG_FLAT, N_CLIP) bf16 [enc_m0 | enc_m1]
                   tdirw_ref,  # (1, N_CLIP)        f32  weight_m * l2norm(tgt-src)
                   img_ref,    # out (2B, IMG_FLAT) f32  [frozen xB ; trainable xB]
                   loss_ref):  # out (1,)           f32  SMEM scalar
    # ---- layer 1: bf16 MXU passes, w+ mean via reshape-reduce ---------------
    h_w_big = jnp.dot(w_ref[...].astype(jnp.bfloat16), w1_ref[...],
                      preferred_element_type=jnp.float32)           # (B*NUM_WS, 128)
    h_w = h_w_big.reshape(B, NUM_WS, N_HID).sum(axis=1) * (1.0 / NUM_WS)  # (B, 128)
    h_c = jnp.dot(c_ref[...].astype(jnp.bfloat16), wc_ref[...],
                  preferred_element_type=jnp.float32)                # (B, 128)
    h_pre = h_w + h_c + b1_ref[...]                                  # (B, 128)
    h = jnp.where(h_pre > 0.0, h_pre, 0.2 * h_pre)                   # leaky ReLU (f32)

    # ---- layer 2: block-diagonal LHS via lane masks (no lane shuffles) ------
    lane_b = jax.lax.broadcasted_iota(jnp.int32, (B, N_HID), 1)
    h_fz = jnp.where(lane_b < HIDDEN, h, 0.0)    # frozen half in lanes 0..63
    h_tz = jnp.where(lane_b >= HIDDEN, h, 0.0)   # trainable half in lanes 64..127
    h_stack = jnp.concatenate([h_fz, h_tz], axis=0)                  # (2B, 128)

    b2_full = jnp.concatenate(
        [jnp.broadcast_to(b2_ref[0:1, :], (B, IMG_FLAT)),
         jnp.broadcast_to(b2_ref[1:2, :], (B, IMG_FLAT))], axis=0)   # (2B, 768)

    img = jnp.tanh(
        jnp.dot(h_stack.astype(jnp.bfloat16), w2_ref[...],
                preferred_element_type=jnp.float32) + b2_full)       # (2B, 768) f32
    img_ref[...] = img

    # ---- CLIP: encode all 4 images with both encoders in one matmul --------
    emb = jnp.dot(img.astype(jnp.bfloat16), enc_ref[...],
                  preferred_element_type=jnp.float32)                # (2B, 128)

    # per-model (64-lane group) l2 normalization of all 4 embeddings at once
    lane_2b = jax.lax.broadcasted_iota(jnp.int32, (2 * B, N_CLIP), 1)
    m0_2b = lane_2b < CLIP_DIM
    sq = emb * emb
    ss0 = jnp.sum(jnp.where(m0_2b, sq, 0.0), axis=-1, keepdims=True)  # (2B, 1)
    ss1 = jnp.sum(jnp.where(m0_2b, 0.0, sq), axis=-1, keepdims=True)  # (2B, 1)
    inv = jnp.where(m0_2b,
                    jax.lax.rsqrt(ss0 + 1e-8),
                    jax.lax.rsqrt(ss1 + 1e-8))                        # (2B, 128)
    emb_n = emb * inv

    # per-model normalized image direction (trainable - frozen)
    img_dir = emb_n[B:, :] - emb_n[:B, :]                             # (B, 128)
    lane_bm = jax.lax.broadcasted_iota(jnp.int32, (B, N_CLIP), 1)
    m0_b = lane_bm < CLIP_DIM
    dsq = img_dir * img_dir
    ds0 = jnp.sum(jnp.where(m0_b, dsq, 0.0), axis=-1, keepdims=True)  # (B, 1)
    ds1 = jnp.sum(jnp.where(m0_b, 0.0, dsq), axis=-1, keepdims=True)  # (B, 1)
    dinv = jnp.where(m0_b,
                     jax.lax.rsqrt(ds0 + 1e-8),
                     jax.lax.rsqrt(ds1 + 1e-8))                       # (B, 128)
    dir_n = img_dir * dinv

    # cosine with (weight-scaled) text directions, summed over models & batch:
    #   loss = sum_m w_m - (1/B) * sum_b sum_m w_m * cos_{b,m}
    wcos = jnp.sum(dir_n * tdirw_ref[...])                            # scalar
    loss_ref[0] = jnp.float32(W_SUM) - wcos * (1.0 / float(B))


def nadagan_fused_call(w_flat, c_pad, fp):
    vmem = pl.BlockSpec(memory_space=pltpu.MemorySpace.VMEM)
    smem = pl.BlockSpec(memory_space=pltpu.MemorySpace.SMEM)

    flops = 2 * (B * NUM_WS * W_DIM * N_HID          # w @ w1
                 + B * C_PAD * N_HID                 # c @ wc
                 + 2 * B * N_HID * IMG_FLAT          # layer 2
                 + 2 * B * IMG_FLAT * N_CLIP)        # CLIP encode
    bytes_accessed = (w_flat.size * 4 + c_pad.size * 4
                      + fp["w1_cat"].size * 2 + fp["wc_cat"].size * 2
                      + fp["b1_cat"].size * 4 + fp["w2_cat"].size * 2
                      + fp["b2_cat"].size * 4 + fp["enc_cat"].size * 2
                      + fp["tdirw_cat"].size * 4
                      + 2 * B * IMG_FLAT * 4 + 4)
    transcendentals = 2 * B * IMG_FLAT + 4 * B + 2 * B   # tanh + rsqrt pushes

    img_both, loss = pl.pallas_call(
        nadagan_kernel,
        out_shape=(jax.ShapeDtypeStruct((2 * B, IMG_FLAT), jnp.float32),
                   jax.ShapeDtypeStruct((1,), jnp.float32)),
        in_specs=[vmem] * 9,
        out_specs=(vmem, smem),
        cost_estimate=pl.CostEstimate(flops=flops,
                                      transcendentals=transcendentals,
                                      bytes_accessed=bytes_accessed),
        compiler_params=pltpu.CompilerParams(),
    )(w_flat, c_pad, fp["w1_cat"], fp["wc_cat"], fp["b1_cat"], fp["w2_cat"],
      fp["b2_cat"], fp["enc_cat"], fp["tdirw_cat"])
    return img_both, loss[0]


# ---------------------------------------------------------------------------
# Deterministic parameter construction (no checkpoint loading).
# ---------------------------------------------------------------------------
def make_params(key):
    ks = jax.random.split(key, 12)

    def gen_weights(k0, k1, k2, k3, k4):
        return {
            "w1": 0.1 * jax.random.normal(k0, (W_DIM, HIDDEN), jnp.float32),
            "wc": 0.1 * jax.random.normal(k1, (C_DIM, HIDDEN), jnp.float32),
            "b1": 0.01 * jax.random.normal(k2, (1, HIDDEN), jnp.float32),
            "w2": 0.05 * jax.random.normal(k3, (HIDDEN, IMG_FLAT), jnp.float32),
            "b2": 0.01 * jax.random.normal(k4, (1, IMG_FLAT), jnp.float32),
        }

    frozen = gen_weights(*ks[0:5])
    # trainable generator = frozen + small deterministic perturbation
    pk = jax.random.split(ks[5], 5)
    trainable = {
        name: frozen[name] + 0.05 * jax.random.normal(k, frozen[name].shape,
                                                      jnp.float32)
        for (name, _), k in zip(frozen.items(), pk)
    }

    clip = {}
    for i, model_name in enumerate(CLIP_MODELS):
        ck = jax.random.split(ks[6 + i], 3)
        clip[model_name] = {
            "enc": 0.02 * jax.random.normal(ck[0], (IMG_FLAT, CLIP_DIM),
                                            jnp.float32),
            "src_text": jax.random.normal(ck[1], (1, CLIP_DIM), jnp.float32),
            "tgt_text": jax.random.normal(ck[2], (1, CLIP_DIM), jnp.float32),
        }
    return {"frozen": frozen, "trainable": trainable, "clip": clip}


def build_fused_params(params):
    """Assemble the concatenated / padded tensors the fused kernel consumes."""
    f = jax.tree_util.tree_map(jax.lax.stop_gradient, params["frozen"])
    t = params["trainable"]

    # layer 1 (w path): N = [frozen | trainable] (128), bf16 for one MXU pass
    w1_cat = jnp.concatenate([f["w1"], t["w1"]],
                             axis=1).astype(jnp.bfloat16)            # (32, 128)
    # layer 1 (c path): pad K 25 -> 32 with zero rows
    wc = jnp.concatenate([f["wc"], t["wc"]], axis=1)                 # (25, 128)
    wc_cat = jnp.concatenate(
        [wc, jnp.zeros((C_PAD - C_DIM, N_HID), jnp.float32)],
        axis=0).astype(jnp.bfloat16)                                 # (32, 128)
    b1_cat = jnp.concatenate([f["b1"], t["b1"]], axis=1)             # (1, 128)

    # layer 2: stacked rows [w2_frozen ; w2_trainable] -> bf16 (halves DMA)
    w2_cat = jnp.concatenate([f["w2"], t["w2"]],
                             axis=0).astype(jnp.bfloat16)            # (128, 768)
    b2_cat = jnp.concatenate([f["b2"], t["b2"]], axis=0)             # (2, 768)

    # CLIP: concat encoders along output dim (fills 128 lanes), bf16
    enc_cat = jnp.concatenate(
        [params["clip"][m]["enc"] for m in CLIP_MODELS],
        axis=1).astype(jnp.bfloat16)                                 # (768, 128)

    # precompute normalized text directions with the per-model loss weight
    # folded in (input-independent), so the kernel's cosine+weighting is one
    # full-lane reduce.
    tdirs = []
    for m, weight in zip(CLIP_MODELS, CLIP_MODEL_WEIGHTS):
        d = params["clip"][m]["tgt_text"] - params["clip"][m]["src_text"]
        d = d * jax.lax.rsqrt(jnp.sum(d * d, axis=-1, keepdims=True) + 1e-8)
        tdirs.append(jnp.float32(weight) * d)
    tdirw_cat = jnp.concatenate(tdirs, axis=1)                       # (1, 128)

    return {"w1_cat": w1_cat, "wc_cat": wc_cat, "b1_cat": b1_cat,
            "w2_cat": w2_cat, "b2_cat": b2_cat, "enc_cat": enc_cat,
            "tdirw_cat": tdirw_cat}


# ---------------------------------------------------------------------------
# NADAGAN.forward equivalent (single fused pallas_call).
# ---------------------------------------------------------------------------
def nadagan_forward(styles, c, fused_params, input_is_latent=True):
    # input_is_latent=True -> w_styles = styles (mapping network skipped,
    # exactly as in the reference forward).
    w_styles = styles

    # Only two trivial host-side ops remain: a free reshape and a 2x7 zero pad
    # of the camera conditioning; all other prep happens inside the kernel.
    w_flat = w_styles.reshape(B * NUM_WS, W_DIM)                     # (16, 32)
    c_pad = jnp.pad(c, ((0, 0), (0, C_PAD - C_DIM)))                 # (B, 32)

    img_both, clip_loss = nadagan_fused_call(w_flat, c_pad, fused_params)

    # frozen branch under torch.no_grad()  -> stop_gradient
    frozen_img = jax.lax.stop_gradient(
        img_both[:B].reshape(B, IMG_C, IMG_H, IMG_W))                # NCHW
    trainable_img = img_both[B:].reshape(B, IMG_C, IMG_H, IMG_W)     # NCHW
    return [frozen_img, trainable_img], clip_loss


# ---------------------------------------------------------------------------
if __name__ == "__main__":
    key = jax.random.PRNGKey(0)
    k_param, k_z, k_c = jax.random.split(key, 3)

    params = make_params(k_param)
    fused_params = build_fused_params(params)

    # styles in w+ space (input_is_latent=True), camera conditioning c (B, 25)
    styles = jax.random.normal(k_z, (B, NUM_WS, W_DIM), jnp.float32)
    c      = jax.random.normal(k_c, (B, C_DIM), jnp.float32)

    (imgs, clip_loss) = jax.jit(
        lambda s, cc: nadagan_forward(s, cc, fused_params))(styles, c)

    jax.block_until_ready(imgs[0])
    jax.block_until_ready(imgs[1])
    jax.block_until_ready(clip_loss)

    assert imgs[0].shape == (B, IMG_C, IMG_H, IMG_W)
    assert imgs[1].shape == (B, IMG_C, IMG_H, IMG_W)
    assert clip_loss.shape == ()
    assert jnp.isfinite(clip_loss)

    print("KERNEL_OK")
</pallas_src>

<mosaic_0001>
module attributes {stable_mosaic.version = 11 : i64} {
  func.func @nadagan_kernel(%arg0: memref<16x32xf32, #tpu.memory_space<vmem>>, %arg1: memref<2x32xf32, #tpu.memory_space<vmem>>, %arg2: memref<32x128xbf16, #tpu.memory_space<vmem>>, %arg3: memref<32x128xbf16, #tpu.memory_space<vmem>>, %arg4: memref<1x128xf32, #tpu.memory_space<vmem>>, %arg5: memref<128x768xbf16, #tpu.memory_space<vmem>>, %arg6: memref<2x768xf32, #tpu.memory_space<vmem>>, %arg7: memref<768x128xbf16, #tpu.memory_space<vmem>>, %arg8: memref<1x128xf32, #tpu.memory_space<vmem>>, %arg9: memref<4x768xf32, #tpu.memory_space<vmem>>, %arg10: memref<1xf32, #tpu.memory_space<smem>>) attributes {dimension_semantics = [], scalar_prefetch = 0 : i64, scratch_operands = 0 : i64, tpu.core_type = #tpu.core_type<tc>} {
    %c0 = arith.constant 0 : index
    %c0_0 = arith.constant 0 : index
    %0 = vector.load %arg0[%c0, %c0_0] : memref<16x32xf32, #tpu.memory_space<vmem>>, vector<16x32xf32>
    %1 = arith.truncf %0 : vector<16x32xf32> to vector<16x32xbf16>
    %c0_1 = arith.constant 0 : index
    %c0_2 = arith.constant 0 : index
    %2 = vector.load %arg2[%c0_1, %c0_2] : memref<32x128xbf16, #tpu.memory_space<vmem>>, vector<32x128xbf16>
    %cst = arith.constant dense<0.000000e+00> : vector<16x128xf32>
    %3 = tpu.matmul %1, %2, %cst {dimension_numbers = #tpu.dot_dimension_numbers<[1], [0], [0], [1], [0, 0, 1, 1], [], []>} : vector<16x32xbf16>, vector<32x128xbf16>, vector<16x128xf32> -> vector<16x128xf32>
    %4 = vector.shape_cast %3 : vector<16x128xf32> to vector<2x8x128xf32>
    %cst_3 = arith.constant dense<0.000000e+00> : vector<2x128xf32>
    %5 = vector.multi_reduction <add>, %4, %cst_3 [1] : vector<2x8x128xf32> to vector<2x128xf32>
    %cst_4 = arith.constant 1.250000e-01 : f32
    %6 = vector.broadcast %cst_4 : f32 to vector<2x128xf32>
    %7 = arith.mulf %5, %6 : vector<2x128xf32>
    %c0_5 = arith.constant 0 : index
    %c0_6 = arith.constant 0 : index
    %8 = vector.load %arg1[%c0_5, %c0_6] : memref<2x32xf32, #tpu.memory_space<vmem>>, vector<2x32xf32>
    %9 = arith.truncf %8 : vector<2x32xf32> to vector<2x32xbf16>
    %c0_7 = arith.constant 0 : index
    %c0_8 = arith.constant 0 : index
    %10 = vector.load %arg3[%c0_7, %c0_8] : memref<32x128xbf16, #tpu.memory_space<vmem>>, vector<32x128xbf16>
    %cst_9 = arith.constant dense<0.000000e+00> : vector<2x128xf32>
    %11 = tpu.matmul %9, %10, %cst_9 {dimension_numbers = #tpu.dot_dimension_numbers<[1], [0], [0], [1], [0, 0, 1, 1], [], []>} : vector<2x32xbf16>, vector<32x128xbf16>, vector<2x128xf32> -> vector<2x128xf32>
    %12 = arith.addf %7, %11 : vector<2x128xf32>
    %c0_10 = arith.constant 0 : index
    %c0_11 = arith.constant 0 : index
    %13 = vector.load %arg4[%c0_10, %c0_11] : memref<1x128xf32, #tpu.memory_space<vmem>>, vector<1x128xf32>
    %14 = vector.broadcast %13 : vector<1x128xf32> to vector<2x128xf32>
    %15 = arith.addf %12, %14 : vector<2x128xf32>
    %cst_12 = arith.constant 0.000000e+00 : f32
    %16 = vector.broadcast %cst_12 : f32 to vector<2x128xf32>
    %17 = arith.cmpf ogt, %15, %16 : vector<2x128xf32>
    %cst_13 = arith.constant 2.000000e-01 : f32
    %18 = vector.broadcast %cst_13 : f32 to vector<2x128xf32>
    %19 = arith.mulf %18, %15 : vector<2x128xf32>
    %20 = arith.select %17, %15, %19 : vector<2x128xi1>, vector<2x128xf32>
    %21 = tpu.iota {dimensions = array<i32: 1>} : vector<2x128xi32>
    %c64_i32 = arith.constant 64 : i32
    %22 = vector.broadcast %c64_i32 : i32 to vector<2x128xi32>
    %23 = arith.cmpi slt, %21, %22 : vector<2x128xi32>
    %cst_14 = arith.constant 0.000000e+00 : f32
    %24 = vector.broadcast %cst_14 : f32 to vector<2x128xf32>
    %25 = arith.select %23, %20, %24 : vector<2x128xi1>, vector<2x128xf32>
    %c64_i32_15 = arith.constant 64 : i32
    %26 = vector.broadcast %c64_i32_15 : i32 to vector<2x128xi32>
    %27 = arith.cmpi sge, %21, %26 : vector<2x128xi32>
    %cst_16 = arith.constant 0.000000e+00 : f32
    %28 = vector.broadcast %cst_16 : f32 to vector<2x128xf32>
    %29 = arith.select %27, %20, %28 : vector<2x128xi1>, vector<2x128xf32>
    %30 = tpu.concatenate %25, %29 in 0 : vector<2x128xf32>, vector<2x128xf32> -> vector<4x128xf32>
    %c0_17 = arith.constant 0 : index
    %c0_18 = arith.constant 0 : index
    %31 = vector.load %arg6[%c0_17, %c0_18] : memref<2x768xf32, #tpu.memory_space<vmem>>, vector<1x768xf32>
    %32 = vector.shape_cast %31 : vector<1x768xf32> to vector<1x768xf32>
    %33 = vector.broadcast %32 : vector<1x768xf32> to vector<2x768xf32>
    %c1 = arith.constant 1 : index
    %c0_19 = arith.constant 0 : index
    %34 = vector.load %arg6[%c1, %c0_19] : memref<2x768xf32, #tpu.memory_space<vmem>>, vector<1x768xf32>
    %35 = vector.shape_cast %34 : vector<1x768xf32> to vector<1x768xf32>
    %36 = vector.broadcast %35 : vector<1x768xf32> to vector<2x768xf32>
    %37 = tpu.concatenate %33, %36 in 0 : vector<2x768xf32>, vector<2x768xf32> -> vector<4x768xf32>
    %38 = arith.truncf %30 : vector<4x128xf32> to vector<4x128xbf16>
    %c0_20 = arith.constant 0 : index
    %c0_21 = arith.constant 0 : index
    %39 = vector.load %arg5[%c0_20, %c0_21] : memref<128x768xbf16, #tpu.memory_space<vmem>>, vector<128x768xbf16>
    %cst_22 = arith.constant dense<0.000000e+00> : vector<4x768xf32>
    %40 = tpu.matmul %38, %39, %cst_22 {dimension_numbers = #tpu.dot_dimension_numbers<[1], [0], [0], [1], [0, 0, 1, 1], [], []>} : vector<4x128xbf16>, vector<128x768xbf16>, vector<4x768xf32> -> vector<4x768xf32>
    %41 = arith.addf %40, %37 : vector<4x768xf32>
    %42 = math.tanh %41 : vector<4x768xf32>
    %c0_23 = arith.constant 0 : index
    %c0_24 = arith.constant 0 : index
    %43 = vector.load %arg9[%c0_23, %c0_24] : memref<4x768xf32, #tpu.memory_space<vmem>>, vector<4x768xf32>
    tpu.vector_store %arg9[%c0_23, %c0_24], %42 {strides = array<i32>} : memref<4x768xf32, #tpu.memory_space<vmem>>, vector<4x768xf32>,
    %44 = arith.truncf %42 : vector<4x768xf32> to vector<4x768xbf16>
    %c0_25 = arith.constant 0 : index
    %c0_26 = arith.constant 0 : index
    %45 = vector.load %arg7[%c0_25, %c0_26] : memref<768x128xbf16, #tpu.memory_space<vmem>>, vector<768x128xbf16>
    %cst_27 = arith.constant dense<0.000000e+00> : vector<4x128xf32>
    %46 = tpu.matmul %44, %45, %cst_27 {dimension_numbers = #tpu.dot_dimension_numbers<[1], [0], [0], [1], [0, 0, 1, 1], [], []>} : vector<4x768xbf16>, vector<768x128xbf16>, vector<4x128xf32> -> vector<4x128xf32>
    %47 = tpu.iota {dimensions = array<i32: 1>} : vector<4x128xi32>
    %c64_i32_28 = arith.constant 64 : i32
    %48 = vector.broadcast %c64_i32_28 : i32 to vector<4x128xi32>
    %49 = arith.cmpi slt, %47, %48 : vector<4x128xi32>
    %50 = arith.mulf %46, %46 : vector<4x128xf32>
    %cst_29 = arith.constant 0.000000e+00 : f32
    %51 = vector.broadcast %cst_29 : f32 to vector<4x128xf32>
    %52 = arith.select %49, %50, %51 : vector<4x128xi1>, vector<4x128xf32>
    %cst_30 = arith.constant dense<0.000000e+00> : vector<4xf32>
    %53 = vector.multi_reduction <add>, %52, %cst_30 [1] : vector<4x128xf32> to vector<4xf32>
    %54 = vector.shape_cast %53 : vector<4xf32> to vector<4x1xf32>
    %cst_31 = arith.constant 0.000000e+00 : f32
    %55 = vector.broadcast %cst_31 : f32 to vector<4x128xf32>
    %56 = arith.select %49, %55, %50 : vector<4x128xi1>, vector<4x128xf32>
    %cst_32 = arith.constant dense<0.000000e+00> : vector<4xf32>
    %57 = vector.multi_reduction <add>, %56, %cst_32 [1] : vector<4x128xf32> to vector<4xf32>
    %58 = vector.shape_cast %57 : vector<4xf32> to vector<4x1xf32>
    %cst_33 = arith.constant 9.99999993E-9 : f32
    %59 = vector.broadcast %cst_33 : f32 to vector<4x1xf32>
    %60 = arith.addf %54, %59 : vector<4x1xf32>
    %61 = math.rsqrt %60 : vector<4x1xf32>
    %cst_34 = arith.constant 9.99999993E-9 : f32
    %62 = vector.broadcast %cst_34 : f32 to vector<4x1xf32>
    %63 = arith.addf %58, %62 : vector<4x1xf32>
    %64 = math.rsqrt %63 : vector<4x1xf32>
    %65 = vector.shape_cast %61 : vector<4x1xf32> to vector<4x1xf32>
    %66 = vector.broadcast %65 : vector<4x1xf32> to vector<4x128xf32>
    %67 = vector.shape_cast %64 : vector<4x1xf32> to vector<4x1xf32>
    %68 = vector.broadcast %67 : vector<4x1xf32> to vector<4x128xf32>
    %69 = arith.select %49, %66, %68 : vector<4x128xi1>, vector<4x128xf32>
    %70 = arith.mulf %46, %69 : vector<4x128xf32>
    %71 = vector.extract_strided_slice %70 {offsets = [2, 0], sizes = [2, 128], strides = [1, 1]} : vector<4x128xf32> to vector<2x128xf32>
    %72 = vector.extract_strided_slice %70 {offsets = [0, 0], sizes = [2, 128], strides = [1, 1]} : vector<4x128xf32> to vector<2x128xf32>
    %73 = arith.subf %71, %72 : vector<2x128xf32>
    %74 = tpu.iota {dimensions = array<i32: 1>} : vector<2x128xi32>
    %c64_i32_35 = arith.constant 64 : i32
    %75 = vector.broadcast %c64_i32_35 : i32 to vector<2x128xi32>
    %76 = arith.cmpi slt, %74, %75 : vector<2x128xi32>
    %77 = arith.mulf %73, %73 : vector<2x128xf32>
    %cst_36 = arith.constant 0.000000e+00 : f32
    %78 = vector.broadcast %cst_36 : f32 to vector<2x128xf32>
    %79 = arith.select %76, %77, %78 : vector<2x128xi1>, vector<2x128xf32>
    %cst_37 = arith.constant dense<0.000000e+00> : vector<2xf32>
    %80 = vector.multi_reduction <add>, %79, %cst_37 [1] : vector<2x128xf32> to vector<2xf32>
    %81 = vector.shape_cast %80 : vector<2xf32> to vector<2x1xf32>
    %cst_38 = arith.constant 0.000000e+00 : f32
    %82 = vector.broadcast %cst_38 : f32 to vector<2x128xf32>
    %83 = arith.select %76, %82, %77 : vector<2x128xi1>, vector<2x128xf32>
    %cst_39 = arith.constant dense<0.000000e+00> : vector<2xf32>
    %84 = vector.multi_reduction <add>, %83, %cst_39 [1] : vector<2x128xf32> to vector<2xf32>
    %85 = vector.shape_cast %84 : vector<2xf32> to vector<2x1xf32>
    %cst_40 = arith.constant 9.99999993E-9 : f32
    %86 = vector.broadcast %cst_40 : f32 to vector<2x1xf32>
    %87 = arith.addf %81, %86 : vector<2x1xf32>
    %88 = math.rsqrt %87 : vector<2x1xf32>
    %cst_41 = arith.constant 9.99999993E-9 : f32
    %89 = vector.broadcast %cst_41 : f32 to vector<2x1xf32>
    %90 = arith.addf %85, %89 : vector<2x1xf32>
    %91 = math.rsqrt %90 : vector<2x1xf32>
    %92 = vector.shape_cast %88 : vector<2x1xf32> to vector<2x1xf32>
    %93 = vector.broadcast %92 : vector<2x1xf32> to vector<2x128xf32>
    %94 = vector.shape_cast %91 : vector<2x1xf32> to vector<2x1xf32>
    %95 = vector.broadcast %94 : vector<2x1xf32> to vector<2x128xf32>
    %96 = arith.select %76, %93, %95 : vector<2x128xi1>, vector<2x128xf32>
    %97 = arith.mulf %73, %96 : vector<2x128xf32>
    %c0_42 = arith.constant 0 : index
    %c0_43 = arith.constant 0 : index
    %98 = vector.load %arg8[%c0_42, %c0_43] : memref<1x128xf32, #tpu.memory_space<vmem>>, vector<1x128xf32>
    %99 = vector.broadcast %98 : vector<1x128xf32> to vector<2x128xf32>
    %100 = arith.mulf %97, %99 : vector<2x128xf32>
    %101 = vector.shape_cast %100 : vector<2x128xf32> to vector<1x2x128xf32>
    %cst_44 = arith.constant dense<0.000000e+00> : vector<1xf32>
    %102 = vector.multi_reduction <add>, %101, %cst_44 [1, 2] : vector<1x2x128xf32> to vector<1xf32>
    %103 = vector.shape_cast %102 : vector<1xf32> to vector<1x1x1xf32>
    %104 = vector.extract %103[0, 0, 0] : f32 from vector<1x1x1xf32>
    %cst_45 = arith.constant 5.000000e-01 : f32
    %105 = arith.mulf %104, %cst_45 : f32
    %cst_46 = arith.constant 1.500000e+00 : f32
    %106 = arith.subf %cst_46, %105 : f32
    %c0_47 = arith.constant 0 : index
    %107 = memref.load %arg10[%c0_47] : memref<1xf32, #tpu.memory_space<smem>>
    memref.store %106, %arg10[%c0_47] : memref<1xf32, #tpu.memory_space<smem>>
    return
  }
}

</mosaic_0001>

<bundles_post_ra>
// kernel: _lambda_.1
= control target key start
LH: loop header
LB: loop body
LE: loop exit
PB: predicated region body
PF: predicated region fallthrough
CT: control target
= control target key end

     0   :  { %16 = vsyncpa [#allocation3], 0  ;;  %s2131_s0 = inlined_call_operand.hbm [shape: f32[16,32], index: 0, kind: input, shape index: {}]   ;;  %s2132_s1 = inlined_call_operand.vmem [shape: f32[2,32], index: 1, kind: input, shape index: {}]   ;;  %s2133_s2 = inlined_call_operand.hbm [shape: bf16[32,128], index: 2, kind: input, shape index: {}]   ;;  %s2134_s3 = inlined_call_operand.hbm [shape: bf16[32,128], index: 3, kind: input, shape index: {}]   ;;  %s2135_s4 = inlined_call_operand.vmem [shape: f32[1,128], index: 4, kind: input, shape index: {}]   ;;  %s2136_s5 = inlined_call_operand.hbm [shape: bf16[128,768], index: 5, kind: input, shape index: {}]   ;;  %s2137_s6 = inlined_call_operand.hbm [shape: f32[2,768], index: 6, kind: input, shape index: {}]   ;;  %s2138_s7 = inlined_call_operand.hbm [shape: bf16[768,128], index: 7, kind: input, shape index: {}]   ;;  %s2139_s8 = inlined_call_operand.vmem [shape: f32[1,128], index: 8, kind: input, shape index: {}]   ;;  %s2140_s9 = inlined_call_operand.vmem [shape: f32[4,768], index: 9, kind: output, shape index: {0}]   ;;  %s2141_s10 = inlined_call_operand.hbm [shape: f32[1], index: 10, kind: output, shape index: {1}]  }
   0x1   :  { %17 = vsyncpa [#allocation6], 0 }
   0x2   :  { %18 = vsyncpa [#allocation9], 0 }
   0x3   :  { %19 = vsyncpa [#allocation12], 0  ;;  %s40_s15 = sshll.u32 %s2133_s2, 4  ;;  %s41_s15 = int_to_ptr.hbm [resolvable:$true] %s40_s15 }
   0x4   :  { %20 = vsyncpa [#allocation4], 0  ;;  %s1964_s16 = smov [#allocation5]   ;;  %s68_s20 = sshll.u32 %s2136_s5, 4  ;;  %s69_s20 = int_to_ptr.hbm [resolvable:$true] %s68_s20 }
   0x5   :  { %s42_s17 = sshll.u32 %s1964_s16, 4  ;;  %s1965_s21 = smov 64   ;;  %s43_s17 = int_to_ptr.vmem [resolvable:$true] %s42_s17 }
   0x6   :  { %s1966_s22 = smov 4   ;;  %s1967_s23 = smov [#allocation8]  }
   0x7   :  { %48 = dma.hbm_to_vmem [thread:$0]  %s41_s15, 256, %s43_s17, [#allocation6], %s1965_s21, %s1965_s21, %s1966_s22  }
   0x8   :  { %s70_s24 = sshll.u32 %s1967_s23, 4  ;;  %s1968_s2 = smov 384   ;;  %s71_s24 = int_to_ptr.vmem [resolvable:$true] %s70_s24 }
   0x9   :  { %s1969_s25 = smov 24   ;;  %s25_s28 = sshll.u32 %s2131_s0, 4  ;;  %s26_s28 = int_to_ptr.hbm [resolvable:$true] %s25_s28 }
   0xa   :  { %76 = dma.hbm_to_vmem [thread:$0]  %s69_s20, 6144, %s71_s24, [#allocation9], %s1968_s2, %s1968_s2, %s1969_s25  }
   0xb   :  { %s1970_s29 = smov [#allocation2]   ;;  %s53_s12 = sshll.u32 %s2134_s3, 4  ;;  %s54_s12 = int_to_ptr.hbm [resolvable:$true] %s53_s12 }
   0xc   :  { %s27_s5 = sshll.u32 %s1970_s29, 4  ;;  %s1971_s13 = smov 128   ;;  %s28_s5 = int_to_ptr.vmem [resolvable:$true] %s27_s5 }
   0xd   :  { %s1972_s14 = smov 8   ;;  %s1973_s15 = smov [#allocation7]  }
   0xe   :  { %33 = dma.hbm_to_vmem [thread:$0]  %s26_s28, 256, %s28_s5, [#allocation3], %s1971_s13, %s1971_s13, %s1972_s14  }
   0xf   :  { %s55_s16 = sshll.u32 %s1973_s15, 4  ;;  %s82_s19 = sshll.u32 %s2137_s6, 4  ;;  %s56_s16 = int_to_ptr.vmem [resolvable:$true] %s55_s16  ;;  %s83_s19 = int_to_ptr.hbm [resolvable:$true] %s82_s19 }
  0x10   :  { %61 = dma.hbm_to_vmem [thread:$0]  %s54_s12, 256, %s56_s16, [#allocation6], %s1965_s21, %s1965_s21, %s1966_s22  }
  0x11   :  { %s92_s3 = sshll.u32 %s2138_s7, 4  ;;  %s1974_s23 = smov [#allocation10]   ;;  %s93_s3 = int_to_ptr.hbm [resolvable:$true] %s92_s3 }
  0x12   :  { %s84_s24 = sshll.u32 %s1974_s23, 4  ;;  %s1975_s2 = smov [#allocation11]   ;;  %s85_s24 = int_to_ptr.vmem [resolvable:$true] %s84_s24 }
  0x13   :  { %87 = dma.hbm_to_vmem [thread:$0]  %s83_s19, 192, %s85_s24, [#allocation9]  }
  0x14   :  { %s94_s25 = sshll.u32 %s1975_s2, 4  ;;  %s95_s25 = int_to_ptr.vmem [resolvable:$true] %s94_s25 }
  0x15   :  { %100 = dma.hbm_to_vmem [thread:$0]  %s93_s3, 6144, %s95_s25, [#allocation12], %s1965_s21, %s1965_s21, %s1966_s22  }
  0x16   :  { %1954 = dma.done.wait [#allocation3], 256  }
  0x17   :  { %1955 = vsyncadd [#allocation3], 4294967040 }
  0x18   :  { %1956 = dma.done.wait [#allocation6], 512  }
  0x19   :  { %1957 = vsyncadd [#allocation6], 4294966784 }
  0x1a   :  { %1958 = dma.done.wait [#allocation9], 6336  }
  0x1b   :  { %1959 = vsyncadd [#allocation9], 4294960960 }
  0x1c   :  { %1960 = dma.done.wait [#allocation12], 6144  }
  0x1d   :  { %1961 = vsyncadd [#allocation12], 4294961152  ;;  %v1662_v0 = vld [vmem:[#allocation5 + $0x8] sm:$0xff]  ;;  %v1661_v1 = vld [vmem:[#allocation5] sm:$0xff]  ;;  %vm147_vm0 = vcmask 261120   ;;  %vm237_vm3 = vcmask 1041409  }
  0x1e   :  { %v128_v2 = vld [vmem:[#allocation2] sm:$0xff]  ;;  %v129_v3 = vld [vmem:[#allocation2 + $0x8] sm:$0xff]  ;;  %157 = vmatpush.bf16.msra.mxu0 %v1662_v0  ;;  %v1710_v8 = vld [vmem:[#allocation8 + $0x164] sm:$0xf0]  ;;  %vm246_vm6 = vcmask 1041408   ;;  %vm665_vm7 = vcmask 1043456  }
  0x1f   :  { %v1664_v4 = vld [vmem:[#allocation7 + $0x8] sm:$0xff]  ;;  %v1663_v5 = vld [vmem:[#allocation7] sm:$0xff]  ;;  %v1449_v11 = vld [vmem:[#allocation8 + $0x168] sm:$0xf0]  ;;  %v130_v17 = vpack.c.bf16 %v129_v3, %v128_v2  ;;  %vm1182_vm14 = vcmask 1043458   ;;  %s1243_s12 = sshll.u32 %s2141_s10, 4  ;;  %s1244_s12 = int_to_ptr.hbm [resolvable:$true] %s1243_s12 }
  0x20   :  { %v179_v6 = vld [vmem:[%s2132_s1] sm:$0x3]  ;;  %206 = vmatpush.bf16.msra.mxu1 %v1664_v4  ;;  %v1707_v10 = vld [vmem:[#allocation8 + $0x154] sm:$0xf]  ;;  %v1423_v12 = vld [vmem:[#allocation8 + $0x120] sm:$0xf] }
  0x21   :  { %v1447_v7 = vld [vmem:[#allocation8 + $0x150] sm:$0xf]  ;;  %v1452_v13 = vor.u32 %v1707_v10, %v1449_v11  ;;  %v1704_v14 = vld [vmem:[#allocation8 + $0x134] sm:$0xf0]  ;;  %v1701_v15 = vld [vmem:[#allocation8 + $0x124] sm:$0xf]  ;;  %v180_v19 = vpack.c.bf16 %v179_v6, %v179_v6 }
  0x22   :  { %v1448_v9 = vor.u32 %v1710_v8, %v1447_v7  ;;  %v1425_v16 = vld [vmem:[#allocation8 + $0x138] sm:$0xf0]  ;;  %v1424_v18 = vor.u32 %v1704_v14, %v1423_v12  ;;  %158 = vmatpush.bf16.msra.mxu0 %v1661_v1  ;;  %v1399_v21 = vld [vmem:[#allocation8 + $0xf0] sm:$0xf]  ;;  %v1698_v22 = vld [vmem:[#allocation8 + $0x104] sm:$0xf0] }
  0x23   :  { %585 = vmatpush.bf16.msra.mxu3 %v1452_v13  ;;  %v1428_v20 = vor.u32 %v1701_v15, %v1425_v16  ;;  %v1695_v23 = vld [vmem:[#allocation8 + $0xf4] sm:$0xf]  ;;  %v1400_v24 = vor.u32 %v1698_v22, %v1399_v21  ;;  %v1401_v25 = vld [vmem:[#allocation8 + $0x108] sm:$0xf0]  ;;  %v1375_v27 = vld [vmem:[#allocation8 + $0xc0] sm:$0xf] }
  0x24   :  { %572 = vmatpush.bf16.msra.mxu2 %v1448_v9  ;;  %207 = vmatpush.bf16.msra.mxu1 %v1663_v5  ;;  %v1404_v26 = vor.u32 %v1695_v23, %v1401_v25  ;;  %v1692_v28 = vld [vmem:[#allocation8 + $0xd4] sm:$0xf0]  ;;  %v1689_v29 = vld [vmem:[#allocation8 + $0xc4] sm:$0xf]  ;;  %v1377_v31 = vld [vmem:[#allocation8 + $0xd8] sm:$0xf0] }
  0x25   :  { %1267 = vmatmul.msk.bf16.vlgmr.msra.gmra.mxu0 %vm147_vm0, %v130_v17  ;;  %v1376_v30 = vor.u32 %v1692_v28, %v1375_v27  ;;  %v1455_v32 = vld [vmem:[#allocation8 + $0x158] sm:$0xf]  ;;  %v1711_v33 = vld [vmem:[#allocation8 + $0x16c] sm:$0xf0]  ;;  %v1380_v34 = vor.u32 %v1689_v29, %v1377_v31  ;;  %v1708_v36 = vld [vmem:[#allocation8 + $0x15c] sm:$0xf] }
  0x26   :  { %v1456_v35 = vor.u32 %v1711_v33, %v1455_v32  ;;  %v1457_v37 = vld [vmem:[#allocation8 + $0x170] sm:$0xf0]  ;;  %v1351_v39 = vld [vmem:[#allocation8 + $0x90] sm:$0xf]  ;;  %v1686_v40 = vld [vmem:[#allocation8 + $0xa4] sm:$0xf0] }
  0x27   :  { %1276 = vmatmul.msk.bf16.vlgmr.msra.gmra.mxu1 %vm147_vm0, %v180_v19  ;;  %586 = vmatpush.bf16.msra.mxu3 %v1428_v20  ;;  %v1460_v38 = vor.u32 %v1708_v36, %v1457_v37  ;;  %v1683_v41 = vld [vmem:[#allocation8 + $0x94] sm:$0xf]  ;;  %v1352_v42 = vor.u32 %v1686_v40, %v1351_v39  ;;  %v1353_v43 = vld [vmem:[#allocation8 + $0xa8] sm:$0xf0]  ;;  %v1431_v44 = vld [vmem:[#allocation8 + $0x128] sm:$0xf] }
  0x28   :  { %573 = vmatpush.bf16.msra.mxu2 %v1424_v18  ;;  %598 = vmatpush.bf16.msrb.mxu0 %v1456_v35  ;;  %v1705_v45 = vld [vmem:[#allocation8 + $0x13c] sm:$0xf0]  ;;  %v1356_v46 = vor.u32 %v1683_v41, %v1353_v43  ;;  %v1702_v48 = vld [vmem:[#allocation8 + $0x12c] sm:$0xf]  ;;  %v1433_v49 = vld [vmem:[#allocation8 + $0x140] sm:$0xf0] }
  0x29   :  { %611 = vmatpush.bf16.msrb.mxu1 %v1460_v38  ;;  %v1432_v47 = vor.u32 %v1705_v45, %v1431_v44  ;;  %v1436_v50 = vor.u32 %v1702_v48, %v1433_v49  ;;  %v1327_v51 = vld [vmem:[#allocation8 + $0x60] sm:$0xf]  ;;  %v1680_v52 = vld [vmem:[#allocation8 + $0x74] sm:$0xf0]  ;;  %v1677_v53 = vld [vmem:[#allocation8 + $0x64] sm:$0xf] }
  0x2a   :  { %v1328_v54 = vor.u32 %v1680_v52, %v1327_v51  ;;  %v1329_v55 = vld [vmem:[#allocation8 + $0x78] sm:$0xf0]  ;;  %v1407_v56 = vld [vmem:[#allocation8 + $0xf8] sm:$0xf]  ;;  %v1699_v57 = vld [vmem:[#allocation8 + $0x10c] sm:$0xf0] }
  0x2b   :  { %587 = vmatpush.bf16.msra.mxu3 %v1404_v26  ;;  %v1332_v58 = vor.u32 %v1677_v53, %v1329_v55  ;;  %v1408_v59 = vor.u32 %v1699_v57, %v1407_v56  ;;  %v1696_v60 = vld [vmem:[#allocation8 + $0xfc] sm:$0xf]  ;;  %v1409_v61 = vld [vmem:[#allocation8 + $0x110] sm:$0xf0]  ;;  %v1303_v63 = vld [vmem:[#allocation8 + $0x30] sm:$0xf] }
  0x2c   :  { %574 = vmatpush.bf16.msra.mxu2 %v1400_v24  ;;  %599 = vmatpush.bf16.msrb.mxu0 %v1432_v47  ;;  %v1412_v62 = vor.u32 %v1696_v60, %v1409_v61  ;;  %v1674_v0 = vld [vmem:[#allocation8 + $0x44] sm:$0xf0]  ;;  %v1671_v1 = vld [vmem:[#allocation8 + $0x34] sm:$0xf]  ;;  %v1305_v3 = vld [vmem:[#allocation8 + $0x48] sm:$0xf0] }
  0x2d   :  { %612 = vmatpush.bf16.msrb.mxu1 %v1436_v50  ;;  %v1304_v2 = vor.u32 %v1674_v0, %v1303_v63  ;;  %v1383_v4 = vld [vmem:[#allocation8 + $0xc8] sm:$0xf]  ;;  %v1693_v5 = vld [vmem:[#allocation8 + $0xdc] sm:$0xf0]  ;;  %v1308_v6 = vor.u32 %v1671_v1, %v1305_v3  ;;  %v1690_v8 = vld [vmem:[#allocation8 + $0xcc] sm:$0xf] }
  0x2e   :  { %v1384_v7 = vor.u32 %v1693_v5, %v1383_v4  ;;  %v1385_v9 = vld [vmem:[#allocation8 + $0xe0] sm:$0xf0]  ;;  %v1279_v11 = vld [vmem:[#allocation8] sm:$0xf]  ;;  %v1668_v12 = vld [vmem:[#allocation8 + $0x14] sm:$0xf0] }
  0x2f   :  { %588 = vmatpush.bf16.msra.mxu3 %v1380_v34  ;;  %v1388_v10 = vor.u32 %v1690_v8, %v1385_v9  ;;  %v1665_v13 = vld [vmem:[#allocation8 + $0x4] sm:$0xf]  ;;  %v1280_v14 = vor.u32 %v1668_v12, %v1279_v11  ;;  %v1281_v15 = vld [vmem:[#allocation8 + $0x18] sm:$0xf0]  ;;  %v1359_v16 = vld [vmem:[#allocation8 + $0x98] sm:$0xf] }
  0x30   :  { %575 = vmatpush.bf16.msra.mxu2 %v1376_v30  ;;  %600 = vmatpush.bf16.msrb.mxu0 %v1408_v59  ;;  %v1687_v17 = vld [vmem:[#allocation8 + $0xac] sm:$0xf0]  ;;  %v1284_v18 = vor.u32 %v1665_v13, %v1281_v15  ;;  %v1684_v20 = vld [vmem:[#allocation8 + $0x9c] sm:$0xf]  ;;  %v1361_v21 = vld [vmem:[#allocation8 + $0xb0] sm:$0xf0] }
  0x31   :  { %613 = vmatpush.bf16.msrb.mxu1 %v1412_v62  ;;  %v1360_v19 = vor.u32 %v1687_v17, %v1359_v16  ;;  %v1463_v22 = vld [vmem:[#allocation8 + $0x160] sm:$0xf]  ;;  %v1364_v23 = vor.u32 %v1684_v20, %v1361_v21  ;;  %v1712_v24 = vld [vmem:[#allocation8 + $0x174] sm:$0xf0]  ;;  %v1709_v25 = vld [vmem:[#allocation8 + $0x164] sm:$0xf] }
  0x32   :  { %v1465_v26 = vld [vmem:[#allocation8 + $0x178] sm:$0xf0]  ;;  %v1464_v27 = vor.u32 %v1712_v24, %v1463_v22  ;;  %v1335_v29 = vld [vmem:[#allocation8 + $0x68] sm:$0xf]  ;;  %v1681_v30 = vld [vmem:[#allocation8 + $0x7c] sm:$0xf0] }
  0x33   :  { %589 = vmatpush.bf16.msra.mxu3 %v1356_v46  ;;  %v1468_v28 = vor.u32 %v1709_v25, %v1465_v26  ;;  %v1678_v31 = vld [vmem:[#allocation8 + $0x6c] sm:$0xf]  ;;  %v1336_v32 = vor.u32 %v1681_v30, %v1335_v29  ;;  %v1337_v33 = vld [vmem:[#allocation8 + $0x80] sm:$0xf0]  ;;  %v1439_v34 = vld [vmem:[#allocation8 + $0x130] sm:$0xf] }
  0x34   :  { %576 = vmatpush.bf16.msra.mxu2 %v1352_v42  ;;  %601 = vmatpush.bf16.msrb.mxu0 %v1384_v7  ;;  %v1706_v35 = vld [vmem:[#allocation8 + $0x144] sm:$0xf0]  ;;  %v1340_v36 = vor.u32 %v1678_v31, %v1337_v33  ;;  %v1703_v38 = vld [vmem:[#allocation8 + $0x134] sm:$0xf]  ;;  %v1441_v39 = vld [vmem:[#allocation8 + $0x148] sm:$0xf0] }
  0x35   :  { %614 = vmatpush.bf16.msrb.mxu1 %v1388_v10  ;;  %v1440_v37 = vor.u32 %v1706_v35, %v1439_v34  ;;  %v1444_v40 = vor.u32 %v1703_v38, %v1441_v39  ;;  %v1311_v41 = vld [vmem:[#allocation8 + $0x38] sm:$0xf]  ;;  %v1675_v42 = vld [vmem:[#allocation8 + $0x4c] sm:$0xf0]  ;;  %v1672_v43 = vld [vmem:[#allocation8 + $0x3c] sm:$0xf] }
  0x36   :  { %v1312_v44 = vor.u32 %v1675_v42, %v1311_v41  ;;  %v1313_v45 = vld [vmem:[#allocation8 + $0x50] sm:$0xf0]  ;;  %v1415_v46 = vld [vmem:[#allocation8 + $0x100] sm:$0xf]  ;;  %v1700_v48 = vld [vmem:[#allocation8 + $0x114] sm:$0xf0] }
  0x37   :  { %590 = vmatpush.bf16.msra.mxu3 %v1332_v58  ;;  %v1316_v47 = vor.u32 %v1672_v43, %v1313_v45  ;;  %v1697_v49 = vld [vmem:[#allocation8 + $0x104] sm:$0xf]  ;;  %v1417_v50 = vld [vmem:[#allocation8 + $0x118] sm:$0xf0]  ;;  %v1416_v52 = vor.u32 %v1700_v48, %v1415_v46  ;;  %v1287_v56 = vld [vmem:[#allocation8 + $0x8] sm:$0xf]  ;;  %v231_v46 = vlaneseq }
  0x38   :  { %577 = vmatpush.bf16.msra.mxu2 %v1328_v54  ;;  %602 = vmatpush.bf16.msrb.mxu0 %v1360_v19  ;;  %v1420_v53 = vor.u32 %v1697_v49, %v1417_v50  ;;  %v1669_v57 = vld [vmem:[#allocation8 + $0x1c] sm:$0xf0]  ;;  %v1666_v59 = vld [vmem:[#allocation8 + $0xc] sm:$0xf]  ;;  %v1289_v60 = vld [vmem:[#allocation8 + $0x20] sm:$0xf0] }
  0x39   :  { %615 = vmatpush.bf16.msrb.mxu1 %v1364_v23  ;;  %v1288_v58 = vor.u32 %v1669_v57, %v1287_v56  ;;  %v1292_v62 = vor.u32 %v1666_v59, %v1289_v60  ;;  %v1391_v63 = vld [vmem:[#allocation8 + $0xd0] sm:$0xf]  ;;  %v1694_v0 = vld [vmem:[#allocation8 + $0xe4] sm:$0xf0]  ;;  %v1691_v1 = vld [vmem:[#allocation8 + $0xd4] sm:$0xf] }
  0x3a   :  { %v1393_v3 = vld [vmem:[#allocation8 + $0xe8] sm:$0xf0]  ;;  %v1688_v7 = vld [vmem:[#allocation8 + $0xb4] sm:$0xf0]  ;;  %v1685_v8 = vld [vmem:[#allocation8 + $0xa4] sm:$0xf] }
  0x3b   :  { %591 = vmatpush.bf16.msra.mxu3 %v1308_v6  ;;  %v1396_v5 = vor.u32 %v1691_v1, %v1393_v3  ;;  %v1367_v6 = vld [vmem:[#allocation8 + $0xa0] sm:$0xf]  ;;  %v1369_v11 = vld [vmem:[#allocation8 + $0xb8] sm:$0xf0]  ;;  %v1682_v15 = vld [vmem:[#allocation8 + $0x84] sm:$0xf0] }
  0x3c   :  { %578 = vmatpush.bf16.msra.mxu2 %v1304_v2  ;;  %603 = vmatpush.bf16.msrb.mxu0 %v1336_v32  ;;  %v1392_v2 = vor.u32 %v1694_v0, %v1391_v63  ;;  %v1368_v10 = vor.u32 %v1688_v7, %v1367_v6  ;;  %v1372_v13 = vor.u32 %v1685_v8, %v1369_v11  ;;  %v1679_v16 = vld [vmem:[#allocation8 + $0x74] sm:$0xf]  ;;  %v1345_v20 = vld [vmem:[#allocation8 + $0x88] sm:$0xf0]  ;;  %v1319_v25 = vld [vmem:[#allocation8 + $0x40] sm:$0xf] }
  0x3d   :  { %616 = vmatpush.bf16.msrb.mxu1 %v1340_v36  ;;  %v1348_v24 = vor.u32 %v1679_v16, %v1345_v20  ;;  %v1676_v26 = vld [vmem:[#allocation8 + $0x54] sm:$0xf0]  ;;  %v1295_v34 = vld [vmem:[#allocation8 + $0x10] sm:$0xf]  ;;  %v1670_v35 = vld [vmem:[#allocation8 + $0x24] sm:$0xf0] }
  0x3e   :  { %v1320_v30 = vor.u32 %v1676_v26, %v1319_v25  ;;  %v1667_v36 = vld [vmem:[#allocation8 + $0x14] sm:$0xf]  ;;  %v1296_v39 = vor.u32 %v1670_v35, %v1295_v34  ;;  %v1776_v43 = vld [vmem:[%s2135_s4] ss:$0 sm:$0xff]  ;;  %v1720_v49 = vld [vmem:[#allocation11 + $0x38] sm:$0xff]  ;;  %s1976_s15 = smov [#allocation13]  }
  0x3f   :  { %592 = vmatpush.bf16.msra.mxu3 %v1284_v18  ;;  %v1728_v50 = vld [vmem:[#allocation11 + $0x78] sm:$0xff]  ;;  %v1726_v59 = vld [vmem:[#allocation11 + $0x68] sm:$0xff]  ;;  %v1717_v0 = vld [vmem:[#allocation11 + $0x20] sm:$0xff] }
  0x40   :  { %579 = vmatpush.bf16.msra.mxu2 %v1280_v14  ;;  %604 = vmatpush.bf16.msrb.mxu0 %v1312_v44  ;;  %v1343_v14 = vld [vmem:[#allocation8 + $0x70] sm:$0xf]  ;;  %v1736_v6 = vld [vmem:[#allocation11 + $0xb8] sm:$0xff]  ;;  %v1743_v11 = vld [vmem:[#allocation11 + $0xf0] sm:$0xff] }
  0x41   :  { %617 = vmatpush.bf16.msrb.mxu1 %v1316_v47  ;;  %v1344_v21 = vor.u32 %v1682_v15, %v1343_v14  ;;  %v1725_v1 = vld [vmem:[#allocation11 + $0x60] sm:$0xff]  ;;  %v1744_v7 = vld [vmem:[#allocation11 + $0xf8] sm:$0xff]  ;;  %v1734_v14 = vld [vmem:[#allocation11 + $0xa8] sm:$0xff] }
  0x42   :  { %v1716_v8 = vld [vmem:[#allocation11 + $0x18] sm:$0xff]  ;;  %v1742_v15 = vld [vmem:[#allocation11 + $0xe8] sm:$0xff]  ;;  %v1721_v25 = vld [vmem:[#allocation11 + $0x40] sm:$0xff] }
  0x43   :  { %637 = vmatpush.bf16.msrb.mxu3 %v1468_v28  ;;  %v1321_v28 = vld [vmem:[#allocation8 + $0x58] sm:$0xf0]  ;;  %v1714_v16 = vld [vmem:[#allocation11 + $0x8] sm:$0xff]  ;;  %v1732_v20 = vld [vmem:[#allocation11 + $0x98] sm:$0xff] }
  0x44   :  { %624 = vmatpush.bf16.msrb.mxu2 %v1464_v27  ;;  %605 = vmatpush.bf16.msrb.mxu0 %v1288_v58  ;;  %v1673_v27 = vld [vmem:[#allocation8 + $0x44] sm:$0xf]  ;;  %v1718_v58 = vld [vmem:[#allocation11 + $0x28] sm:$0xff] }
  0x45   :  { %618 = vmatpush.bf16.msrb.mxu1 %v1292_v62  ;;  %v1324_v33 = vor.u32 %v1673_v27, %v1321_v28  ;;  %v1752_v26 = vld [vmem:[#allocation11 + $0x138] sm:$0xff]  ;;  %v1730_v28 = vld [vmem:[#allocation11 + $0x88] sm:$0xff] }
  0x46   :  { %v1760_v27 = vld [vmem:[#allocation11 + $0x178] sm:$0xff]  ;;  %v1750_v34 = vld [vmem:[#allocation11 + $0x128] sm:$0xff] }
  0x47   :  { %638 = vmatpush.bf16.msrb.mxu3 %v1444_v40  ;;  %v1758_v35 = vld [vmem:[#allocation11 + $0x168] sm:$0xff] }
  0x48   :  { %625 = vmatpush.bf16.msrb.mxu2 %v1440_v37  ;;  %v1297_v37 = vld [vmem:[#allocation8 + $0x28] sm:$0xf0]  ;;  %1065 = vmatpush.bf16.msra.mxu0 %v1720_v49  ;;  %v1754_v49 = vld [vmem:[#allocation11 + $0x148] sm:$0xff] }
  0x49   :  { %v1300_v44 = vor.u32 %v1667_v36, %v1297_v37  ;;  %1078 = vmatpush.bf16.msra.mxu1 %v1728_v50  ;;  %v1749_v36 = vld [vmem:[#allocation11 + $0x120] sm:$0xff] }
  0x4a   :  { %v1757_v37 = vld [vmem:[#allocation11 + $0x160] sm:$0xff] }
  0x4b   :  { %639 = vmatpush.bf16.msrb.mxu3 %v1420_v53  ;;  %v1727_v53 = vld [vmem:[#allocation11 + $0x70] sm:$0xff] }
  0x4c   :  { %626 = vmatpush.bf16.msrb.mxu2 %v1416_v52  ;;  %v1719_v52 = vld [vmem:[#allocation11 + $0x30] sm:$0xff] }
  0x4d   :  { %1066 = vmatpush.bf16.msra.mxu0 %v1719_v52  ;;  %1079 = vmatpush.bf16.msra.mxu1 %v1727_v53  ;;  %v1745_v52 = vld [vmem:[#allocation11 + $0x100] sm:$0xff] }
  0x4e   :  { %v1753_v53 = vld [vmem:[#allocation11 + $0x140] sm:$0xff] }
  0x4f   :  { %640 = vmatpush.bf16.msrb.mxu3 %v1396_v5 }
  0x50   :  { %627 = vmatpush.bf16.msrb.mxu2 %v1392_v2 }
  0x51   :  { %1067 = vmatpush.bf16.msra.mxu0 %v1718_v58  ;;  %1080 = vmatpush.bf16.msra.mxu1 %v1726_v59 }
  0x53   :  { %641 = vmatpush.bf16.msrb.mxu3 %v1372_v13  ;;  %v1723_v13 = vld [vmem:[#allocation11 + $0x50] sm:$0xff] }
  0x54   :  { %628 = vmatpush.bf16.msrb.mxu2 %v1368_v10  ;;  %v1735_v10 = vld [vmem:[#allocation11 + $0xb0] sm:$0xff] }
  0x55   :  { %1068 = vmatpush.bf16.msra.mxu0 %v1717_v0  ;;  %1081 = vmatpush.bf16.msra.mxu1 %v1725_v1 }
  0x57   :  { %642 = vmatpush.bf16.msrb.mxu3 %v1348_v24  ;;  %v1713_v24 = vld [vmem:[#allocation11] sm:$0xff] }
  0x58   :  { %629 = vmatpush.bf16.msrb.mxu2 %v1344_v21  ;;  %v1740_v21 = vld [vmem:[#allocation11 + $0xd8] sm:$0xff] }
  0x59   :  { %1069 = vmatpush.bf16.msra.mxu0 %v1716_v8 }
  0x5b   :  { %643 = vmatpush.bf16.msrb.mxu3 %v1324_v33  ;;  %v1737_v33 = vld [vmem:[#allocation11 + $0xc0] sm:$0xff] }
  0x5c   :  { %630 = vmatpush.bf16.msrb.mxu2 %v1320_v30  ;;  %v1751_v30 = vld [vmem:[#allocation11 + $0x130] sm:$0xff] }
  0x5f   :  { %644 = vmatpush.bf16.msrb.mxu3 %v1300_v44 }
  0x60   :  { %631 = vmatpush.bf16.msrb.mxu2 %v1296_v39  ;;  %v1756_v39 = vld [vmem:[#allocation11 + $0x158] sm:$0xff] }
  0xa2   :  { %v160_v51 = vpop.f32.mrf.mxu0 }
  0xa3   :  { %v165_v54 = vrot.slane %v160_v51, 4 }
  0xa4   :  { %v2062_v55 = vpop.f32.mrf.mxu1 }
  0xa5   :  { %v166_v61 = vadd.f32 %v165_v54, %v160_v51  ;;  %v214_v41 = vrot.slane %v2062_v55, 1  ;;  %v2069_v54 = vand.u32 127, %v231_v46 }
  0xa7   :  { %v167_v4 = vrot.slane %v166_v61, 2  ;;  %vm241_vm4 = vcmp.ge.s32.totalorder %v2069_v54, 64  ;;  %vm233_vm5 = vcmp.lt.s32.totalorder %v2069_v54, 64 }
  0xa9   :  { %v168_v9 = vadd.f32 %v167_v4, %v166_v61 }
  0xaa   :  { %v162_v12 = vpop.f32.mrf.mxu0 }
  0xab   :  { %v169_v17 = vrot.slane %v168_v9, 1  ;;  %v171_v18 = vrot.slane %v162_v12, 4 }
  0xac   :  { %v211_v19 = vpop.f32.mrf.mxu1 }
  0xad   :  { %v172_v22 = vadd.f32 %v171_v18, %v162_v12  ;;  %v170_v23 = vadd.f32 %v169_v17, %v168_v9  ;;  %v1724_v9 = vld [vmem:[#allocation11 + $0x58] sm:$0xff]  ;;  %v1715_v12 = vld [vmem:[#allocation11 + $0x10] sm:$0xff]  ;;  %v1722_v17 = vld [vmem:[#allocation11 + $0x48] sm:$0xff] }
  0xae   :  { %1082 = vmatpush.bf16.msra.mxu1 %v1724_v9  ;;  %1070 = vmatpush.bf16.msra.mxu0 %v1715_v12  ;;  %v1733_v18 = vld [vmem:[#allocation11 + $0xa0] sm:$0xff] }
  0xaf   :  { %v173_v29 = vrot.slane %v172_v22, 2  ;;  %v177_v32 = vmul.f32 0.125, %v170_v23  ;;  %v1741_v19 = vld [vmem:[#allocation11 + $0xe0] sm:$0xff]  ;;  %v1739_v23 = vld [vmem:[#allocation11 + $0xd0] sm:$0xff] }
  0xb1   :  { %v174_v31 = vadd.f32 %v173_v29, %v172_v22  ;;  %v217_v42 = vadd.f32 %v2062_v55, %v177_v32  ;;  %v1731_v22 = vld [vmem:[#allocation11 + $0x90] sm:$0xff]  ;;  %v1738_v29 = vld [vmem:[#allocation11 + $0xc8] sm:$0xff]  ;;  %v1729_v32 = vld [vmem:[#allocation11 + $0x80] sm:$0xff] }
  0xb2   :  { %1083 = vmatpush.bf16.msra.mxu1 %v1723_v13  ;;  %1071 = vmatpush.bf16.msra.mxu0 %v1714_v16 }
  0xb3   :  { %v175_v38 = vrot.slane %v174_v31, 1  ;;  %v223_v48 = vadd.f32 %v1776_v43, %v217_v42  ;;  %v2076_v42 = vld [vmem:[#allocation10] ss:$2 sm:$0x3f] }
  0xb4   :  { %v252_v44 = vperm.slane %v2076_v42, 2  ;;  %v253_v46 = vperm.slane %v2076_v42, 3  ;;  %v254_v16 = vperm.slane %v2076_v42, 4 }
  0xb5   :  { %v176_v40 = vadd.f32 %v175_v38, %v174_v31  ;;  %v227_v55 = vmul.f32 0.2, %v223_v48  ;;  %vm225_vm2 = vcmp.gt.f32.partialorder %v223_v48, 0.0  ;;  %v1759_v31 = vld [vmem:[#allocation11 + $0x170] sm:$0xff]  ;;  %v1748_v38 = vld [vmem:[#allocation11 + $0x118] sm:$0xff] }
  0xb6   :  { %1084 = vmatpush.bf16.msra.mxu1 %v1722_v17  ;;  %1072 = vmatpush.bf16.msra.mxu0 %v1713_v24 }
  0xb7   :  { %v178_v45 = vmul.f32 0.125, %v176_v40  ;;  %v229_v61 = vsel %vm225_vm2, %v223_v48, %v227_v55  ;;  %v1747_v40 = vld [vmem:[#allocation11 + $0x110] sm:$0xff]  ;;  %v1746_v48 = vld [vmem:[#allocation11 + $0x108] sm:$0xff]  ;;  %v250_v55 = vperm.slane %v2076_v42, 0 }
  0xb9   :  { %v218_v47 = vadd.f32 %v214_v41, %v178_v45  ;;  %v1755_v41 = vld [vmem:[#allocation11 + $0x150] sm:$0xff] }
  0xba   :  { %1085 = vmatpush.bf16.msra.mxu1 %v1721_v25 }
  0xbb   :  { %v224_v51 = vadd.f32 %v1776_v43, %v218_v47  ;;  %v2078_v43 = vld [vmem:[#allocation10 + $0x1] ss:$2 sm:$0x3f] }
  0xbc   :  { %v267_v45 = vperm.slane %v2078_v43, 2  ;;  %v268_v47 = vperm.slane %v2078_v43, 3  ;;  %v266_v58 = vperm.slane %v2078_v43, 1 }
  0xbd   :  { %vm226_vm1 = vcmp.gt.f32.partialorder %v224_v51, 0.0  ;;  %v228_v56 = vmul.f32 0.2, %v224_v51 }
  0xbe   :  { %v279_v50 = vsel %vm246_vm6, %v252_v44, %v267_v45 }
  0xbf   :  { %v230_v57 = vsel %vm226_vm1, %v224_v51, %v228_v56  ;;  %v280_v51 = vsel %vm246_vm6, %v253_v46, %v268_v47  ;;  %v265_v56 = vperm.slane %v2078_v43, 0 }
  0xc0   :  { %v236_v60 = vrot.slane %v230_v57, 7  ;;  %v251_v57 = vperm.slane %v2076_v42, 1 }
  0xc2   :  { %v238_v62 = vsel %vm237_vm3, %v236_v60, %v229_v61  ;;  %v278_v0 = vsel %vm246_vm6, %v251_v57, %v266_v58 }
  0xc3   :  { %v242_v63 = vsel %vm241_vm4, %v238_v62, 0.0  ;;  %v240_v3 = vsel %vm233_vm5, %v238_v62, 0.0 }
  0xc4   :  { %v244_v2 = vrot.slane %v242_v63, 6  ;;  %v277_v63 = vsel %vm246_vm6, %v250_v55, %v265_v56 }
  0xc6   :  { %v247_v4 = vsel %vm246_vm6, %v240_v3, %v244_v2 }
  0xc7   :  { %v283_v5 = vpack.c.bf16 %v247_v4, %v247_v4 }
  0xc9   :  { %580 = vmatmul.bf16.vlgmr.msra.gmra.mxu2 %v283_v5  ;;  %593 = vmatmul.bf16.vlgmr.msra.gmra.mxu3 %v283_v5 }
  0xca   :  { %606 = vmatmul.bf16.vlgmr.msrb.gmra.mxu0 %v283_v5  ;;  %619 = vmatmul.bf16.vlgmr.msrb.gmra.mxu1 %v283_v5 }
  0xcb   :  { %1091 = vmatpush.bf16.msra.mxu2 %v1736_v6  ;;  %1104 = vmatpush.bf16.msra.mxu3 %v1744_v7 }
  0xcc   :  { %1117 = vmatpush.bf16.msrb.mxu0 %v1752_v26  ;;  %1130 = vmatpush.bf16.msrb.mxu1 %v1760_v27 }
  0xcf   :  { %1092 = vmatpush.bf16.msra.mxu2 %v1735_v10  ;;  %1105 = vmatpush.bf16.msra.mxu3 %v1743_v11 }
  0xd0   :  { %1118 = vmatpush.bf16.msrb.mxu0 %v1751_v30  ;;  %1131 = vmatpush.bf16.msrb.mxu1 %v1759_v31 }
  0xd3   :  { %1093 = vmatpush.bf16.msra.mxu2 %v1734_v14  ;;  %1106 = vmatpush.bf16.msra.mxu3 %v1742_v15 }
  0xd4   :  { %1119 = vmatpush.bf16.msrb.mxu0 %v1750_v34  ;;  %1132 = vmatpush.bf16.msrb.mxu1 %v1758_v35 }
  0xd7   :  { %1094 = vmatpush.bf16.msra.mxu2 %v1733_v18  ;;  %1107 = vmatpush.bf16.msra.mxu3 %v1741_v19  ;;  %v269_v19 = vperm.slane %v2078_v43, 4 }
  0xd8   :  { %1120 = vmatpush.bf16.msrb.mxu0 %v1749_v36  ;;  %1133 = vmatpush.bf16.msrb.mxu1 %v1757_v37 }
  0xd9   :  { %632 = vmatmul.bf16.vlgmr.msrb.gmra.mxu2 %v283_v5  ;;  %645 = vmatmul.bf16.vlgmr.msrb.gmra.mxu3 %v283_v5  ;;  %v281_v25 = vsel %vm246_vm6, %v254_v16, %v269_v19 }
  0xdb   :  { %1095 = vmatpush.bf16.msra.mxu2 %v1732_v20  ;;  %1108 = vmatpush.bf16.msra.mxu3 %v1740_v21  ;;  %v255_v20 = vperm.slane %v2076_v42, 5  ;;  %v270_v21 = vperm.slane %v2078_v43, 5 }
  0xdc   :  { %1121 = vmatpush.bf16.msrb.mxu0 %v1748_v38  ;;  %1134 = vmatpush.bf16.msrb.mxu1 %v1756_v39 }
  0xdd   :  { %v282_v26 = vsel %vm246_vm6, %v255_v20, %v270_v21 }
  0xdf   :  { %1096 = vmatpush.bf16.msra.mxu2 %v1731_v22  ;;  %1109 = vmatpush.bf16.msra.mxu3 %v1739_v23 }
  0xe0   :  { %1122 = vmatpush.bf16.msrb.mxu0 %v1747_v40  ;;  %1135 = vmatpush.bf16.msrb.mxu1 %v1755_v41 }
  0xe3   :  { %1097 = vmatpush.bf16.msra.mxu2 %v1730_v28  ;;  %1110 = vmatpush.bf16.msra.mxu3 %v1738_v29 }
  0xe4   :  { %1123 = vmatpush.bf16.msrb.mxu0 %v1746_v48  ;;  %1136 = vmatpush.bf16.msrb.mxu1 %v1754_v49 }
  0xe7   :  { %1098 = vmatpush.bf16.msra.mxu2 %v1729_v32  ;;  %1111 = vmatpush.bf16.msra.mxu3 %v1737_v33 }
  0xe8   :  { %1124 = vmatpush.bf16.msrb.mxu0 %v1745_v52  ;;  %1137 = vmatpush.bf16.msrb.mxu1 %v1753_v53 }
 0x147   :  { %v607_v59 = vpop.f32.mrf.mxu0  ;;  %v620_v60 = vpop.f32.mrf.mxu1 }
 0x148   :  { %v608_v61 = vadd.f32 %v607_v59, %v279_v50  ;;  %v621_v62 = vadd.f32 %v620_v60, %v280_v51 }
 0x14a   :  { %1778 = vtanh.f32 %v608_v61 }
 0x14b   :  { %1780 = vtanh.f32 %v621_v62 }
 0x14c   :  { %v581_v1 = vpop.f32.mrf.mxu2  ;;  %v594_v2 = vpop.f32.mrf.mxu3 }
 0x14d   :  { %v582_v3 = vadd.f32 %v581_v1, %v277_v63  ;;  %v595_v4 = vadd.f32 %v594_v2, %v278_v0 }
 0x14f   :  { %1782 = vtanh.f32 %v582_v3  ;;  %v609_v5 = vpop.f32.mrf.mxu0  ;;  %v622_v6 = vpop.f32.mrf.mxu1 }
 0x150   :  { %v1779_v7 = vpop.eup %1778  ;;  %1784 = vtanh.f32 %v595_v4 }
 0x151   :  { %v1781_v8 = vpop.eup %1780  ;;  %v677_v9 = vpack.c.bf16 %v1779_v7, %v1779_v7 }
 0x152   :  { %v663_v10 = vrot.slane %v1781_v8, 4  ;;  %v678_v11 = vpack.c.bf16 %v1781_v8, %v1781_v8 }
 0x153   :  { %1099 = vmatmul.bf16.vlgmr.msra.gmra.mxu2 %v677_v9 }
 0x154   :  { %1112 = vmatmul.bf16.vlgmr.msra.gmra.mxu3 %v678_v11  ;;  %v583_v12 = vpop.f32.mrf.mxu2  ;;  %v596_v13 = vpop.f32.mrf.mxu3  ;;  %v667_v14 = vsel %vm665_vm7, %v1779_v7, %v663_v10 }
 0x155   :  { %v1783_v15 = vpop.eup %1782  ;;  %673 = vst [vmem:[%s2140_s9 + $0x8] sm:$0xff] %v667_v14 }
 0x156   :  { %v1785_v17 = vpop.eup %1784  ;;  %v675_v18 = vpack.c.bf16 %v1783_v15, %v1783_v15 }
 0x157   :  { %v662_v22 = vrot.slane %v1785_v17, 4  ;;  %v676_v23 = vpack.c.bf16 %v1785_v17, %v1785_v17 }
 0x158   :  { %1073 = vmatmul.bf16.vlgmr.msra.gmra.mxu0 %v675_v18 }
 0x159   :  { %1086 = vmatmul.bf16.vlgmr.msra.gmra.mxu1 %v676_v23  ;;  %v666_v24 = vsel %vm665_vm7, %v1783_v15, %v662_v22 }
 0x15a   :  { %672 = vst [vmem:[%s2140_s9] sm:$0xff] %v666_v24 }
 0x15c   :  { %v633_v27 = vpop.f32.mrf.mxu2  ;;  %v646_v28 = vpop.f32.mrf.mxu3 }
 0x15d   :  { %v634_v29 = vadd.f32 %v633_v27, %v281_v25  ;;  %v647_v30 = vadd.f32 %v646_v28, %v282_v26 }
 0x15f   :  { %1786 = vtanh.f32 %v634_v29 }
 0x160   :  { %1788 = vtanh.f32 %v647_v30 }
 0x164   :  { %v635_v31 = vpop.f32.mrf.mxu2  ;;  %v648_v32 = vpop.f32.mrf.mxu3 }
 0x165   :  { %v1787_v33 = vpop.eup %1786 }
 0x166   :  { %v1789_v34 = vpop.eup %1788  ;;  %v679_v35 = vpack.c.bf16 %v1787_v33, %v1787_v33 }
 0x167   :  { %v664_v36 = vrot.slane %v1789_v34, 4  ;;  %v680_v37 = vpack.c.bf16 %v1789_v34, %v1789_v34 }
 0x168   :  { %1125 = vmatmul.bf16.vlgmr.msrb.gmra.mxu0 %v679_v35 }
 0x169   :  { %1138 = vmatmul.bf16.vlgmr.msrb.gmra.mxu1 %v680_v37  ;;  %v668_v38 = vsel %vm665_vm7, %v1787_v33, %v664_v36 }
 0x16a   :  { %674 = vst [vmem:[%s2140_s9 + $0x10] sm:$0xff] %v668_v38 }
 0x1d5   :  { %v1074_v39 = vpop.f32.mrf.mxu0 }
 0x1d6   :  { %v1087_v40 = vpop.f32.mrf.mxu1  ;;  %v1100_v41 = vpop.f32.mrf.mxu2 }
 0x1d7   :  { %v1113_v42 = vpop.f32.mrf.mxu3  ;;  %v1088_v43 = vadd.f32 %v1087_v40, %v1074_v39 }
 0x1d9   :  { %v1101_v48 = vadd.f32 %v1100_v41, %v1088_v43  ;;  %v1777_v43 = vld [vmem:[%s2139_s8] ss:$0 sm:$0xff] }
 0x1db   :  { %v1114_v49 = vadd.f32 %v1113_v42, %v1101_v48 }
 0x1dd   :  { %v1076_v44 = vpop.f32.mrf.mxu0 }
 0x1de   :  { %v1089_v45 = vpop.f32.mrf.mxu1  ;;  %v1102_v46 = vpop.f32.mrf.mxu2 }
 0x1df   :  { %v1115_v47 = vpop.f32.mrf.mxu3 }
 0x1e5   :  { %v1126_v50 = vpop.f32.mrf.mxu0 }
 0x1e6   :  { %v1127_v51 = vadd.f32 %v1126_v50, %v1114_v49  ;;  %v1139_v52 = vpop.f32.mrf.mxu1 }
 0x1e8   :  { %v1140_v53 = vadd.f32 %v1139_v52, %v1127_v51 }
 0x1ea   :  { %v1143_v55 = vmul.f32 %v1140_v53, %v1140_v53 }
 0x1ec   :  { %v1144_v56 = vsel %vm233_vm5, %v1143_v55, 0.0  ;;  %v1148_v60 = vsel %vm233_vm5, 0.0, %v1143_v55 }
 0x1ed   :  { %v1128_v57 = vpop.f32.mrf.mxu0  ;;  %v1145_v58 = vsel %vm665_vm7, %v1144_v56, 0.0  ;;  %v1149_v61 = vsel %vm665_vm7, %v1148_v60, 0.0 }
 0x1ee   :  { %v1141_v59 = vpop.f32.mrf.mxu1  ;;  %1146 = vadd.xlane.f32.xlu0 %v1145_v58 }
 0x1f6   :  { %1150 = vadd.xlane.f32.xlu0 %v1149_v61 }
 0x261   :  { %v1147_v62 = vpop.xlane.xlu0 %1146 }
 0x262   :  { %v1152_v63 = vadd.f32 1e-08, %v1147_v62 }
 0x264   :  { %1790 = vrsqrt.f32 %v1152_v63  ;;  %vm1159_vm10 = vweird.f32 %v1152_v63 }
 0x269   :  { %v1151_v0 = vpop.xlane.xlu0 %1150 }
 0x26a   :  { %v1791_v1 = vpop.eup %1790  ;;  %v1163_v2 = vadd.f32 1e-08, %v1151_v0 }
 0x26b   :  { %v1154_v3 = vmul.f32 %v1791_v1, %v1152_v63  ;;  %vm1160_vm8 = vweird.f32 %v1791_v1 }
 0x26c   :  { %1792 = vrsqrt.f32 %v1163_v2  ;;  %vm1161_vm11 = vmor %vm1159_vm10, %vm1160_vm8  ;;  %vm1170_vm12 = vweird.f32 %v1163_v2 }
 0x26d   :  { %v1155_v4 = vmul.f32 %v1791_v1, %v1154_v3 }
 0x26f   :  { %v1156_v5 = vmul.f32 0.5, %v1155_v4 }
 0x271   :  { %v1157_v8 = vsub.f32 1.5, %v1156_v5 }
 0x272   :  { %v1793_v6 = vpop.eup %1792 }
 0x273   :  { %v1165_v7 = vmul.f32 %v1793_v6, %v1163_v2  ;;  %v1158_v11 = vmul.f32 %v1791_v1, %v1157_v8  ;;  %vm1171_vm9 = vweird.f32 %v1793_v6 }
 0x274   :  { %vm1172_vm13 = vmor %vm1170_vm12, %vm1171_vm9 }
 0x275   :  { %v1166_v9 = vmul.f32 %v1793_v6, %v1165_v7  ;;  %v1162_v14 = vsel %vm1161_vm11, %v1791_v1, %v1158_v11 }
 0x277   :  { %v1167_v10 = vmul.f32 0.5, %v1166_v9 }
 0x279   :  { %v1168_v12 = vsub.f32 1.5, %v1167_v10 }
 0x27b   :  { %v1169_v13 = vmul.f32 %v1793_v6, %v1168_v12 }
 0x27d   :  { %v1173_v15 = vsel %vm1172_vm13, %v1793_v6, %v1169_v13 }
 0x27e   :  { %v1174_v16 = vsel %vm233_vm5, %v1162_v14, %v1173_v15 }
 0x27f   :  { %v1175_v17 = vmul.f32 %v1174_v16, %v1140_v53 }
 0x281   :  { %v1177_v18 = vrot.slane %v1175_v17, 6 }
 0x283   :  { %v1179_v19 = vsub.f32 %v1175_v17, %v1177_v18 }
 0x285   :  { %v1180_v20 = vmul.f32 %v1179_v19, %v1179_v19 }
 0x287   :  { %v1181_v21 = vsel %vm233_vm5, %v1180_v20, 0.0  ;;  %v1186_v23 = vsel %vm233_vm5, 0.0, %v1180_v20 }
 0x288   :  { %v1183_v22 = vsel %vm1182_vm14, %v1181_v21, 0.0  ;;  %v1187_v24 = vsel %vm1182_vm14, %v1186_v23, 0.0 }
 0x289   :  { %1184 = vadd.xlane.f32.xlu1 %v1183_v22 }
 0x291   :  { %1188 = vadd.xlane.f32.xlu1 %v1187_v24 }
 0x2fc   :  { %v1185_v25 = vpop.xlane.xlu1 %1184 }
 0x2fd   :  { %v1190_v26 = vadd.f32 1e-08, %v1185_v25 }
 0x2ff   :  { %1794 = vrsqrt.f32 %v1190_v26  ;;  %vm1197_vm1 = vweird.f32 %v1190_v26 }
 0x304   :  { %v1189_v27 = vpop.xlane.xlu1 %1188 }
 0x305   :  { %v1795_v28 = vpop.eup %1794  ;;  %v1201_v29 = vadd.f32 1e-08, %v1189_v27 }
 0x306   :  { %v1192_v30 = vmul.f32 %v1795_v28, %v1190_v26  ;;  %vm1198_vm15 = vweird.f32 %v1795_v28 }
 0x307   :  { %1796 = vrsqrt.f32 %v1201_v29  ;;  %vm1199_vm2 = vmor %vm1197_vm1, %vm1198_vm15  ;;  %vm1208_vm3 = vweird.f32 %v1201_v29 }
 0x308   :  { %v1193_v31 = vmul.f32 %v1795_v28, %v1192_v30 }
 0x30a   :  { %v1194_v32 = vmul.f32 0.5, %v1193_v31 }
 0x30c   :  { %v1195_v35 = vsub.f32 1.5, %v1194_v32 }
 0x30d   :  { %v1797_v33 = vpop.eup %1796 }
 0x30e   :  { %v1203_v34 = vmul.f32 %v1797_v33, %v1201_v29  ;;  %v1196_v38 = vmul.f32 %v1795_v28, %v1195_v35  ;;  %vm1209_vm0 = vweird.f32 %v1797_v33 }
 0x30f   :  { %vm1210_vm4 = vmor %vm1208_vm3, %vm1209_vm0 }
 0x310   :  { %v1204_v36 = vmul.f32 %v1797_v33, %v1203_v34  ;;  %v1200_v41 = vsel %vm1199_vm2, %v1795_v28, %v1196_v38 }
 0x312   :  { %v1205_v37 = vmul.f32 0.5, %v1204_v36 }
 0x314   :  { %v1206_v39 = vsub.f32 1.5, %v1205_v37 }
 0x316   :  { %v1207_v40 = vmul.f32 %v1797_v33, %v1206_v39 }
 0x318   :  { %v1211_v42 = vsel %vm1210_vm4, %v1797_v33, %v1207_v40 }
 0x319   :  { %v1212_v44 = vsel %vm233_vm5, %v1200_v41, %v1211_v42 }
 0x31a   :  { %v1213_v45 = vmul.f32 %v1212_v44, %v1179_v19 }
 0x31c   :  { %v1218_v46 = vmul.f32 %v1777_v43, %v1213_v45 }
 0x31e   :  { %v1220_v47 = vrot.slane %v1218_v46, 2 }
 0x320   :  { %v1222_v48 = vsel %vm246_vm6, %v1220_v47, 0.0 }
 0x321   :  { %1223 = vadd.xlane.f32.xlu2 %v1222_v48 }
 0x394   :  { %v1224_v49 = vpop.xlane.xlu2 %1223 }
 0x395   :  { %v1225_v50 = vrot.slane %v1224_v49, 4 }
 0x397   :  { %v1226_v51 = vadd.f32 %v1225_v50, %v1224_v49 }
 0x399   :  { %v1227_v52 = vrot.slane %v1226_v51, 2 }
 0x39b   :  { %v1228_v53 = vadd.f32 %v1227_v52, %v1226_v51 }
 0x39d   :  { %v1229_v55 = vrot.slane %v1228_v53, 1 }
 0x39f   :  { %v1230_v56 = vadd.f32 %v1229_v55, %v1228_v53 }
 0x3a1   :  { %1761 = vpush %v1230_v56 }
 0x3d2   :  { %s1762_s30 = spop %1761 }
 0x3d3   :  { %s1232_s13 = smul.f32 0.5, %s1762_s30 }
 0x3d5   :  { %s1233_s14 = ssub.f32 1.5, %s1232_s13 }
 0x3d7   :  { %1235 = sst [smem:[#allocation13]] %s1233_s14 }
 0x3d8   :  { %1246 = dma.smem_to_hbm %s1976_s15, 16, %s1244_s12, [#allocation4]  }
 0x3d9   :  { %1962 = dma.done.wait [#allocation4], 16  }
 0x3da   :  { %1963 = vsyncadd [#allocation4], 4294967280 }
 0x3db   :  { %1253 = sfence }
 0x3dc   :  { %1254 = vsyncpa [#allocation3], 1 }
 0x3dd   :  { %1255 = vsyncpa [#allocation6], 1 }
 0x3de   :  { %1256 = vsyncpa [#allocation9], 1 }
 0x3df   :  { %1257 = vsyncpa [#allocation12], 1 }
 0x3e0   :  { %1258 = vsyncpa [#allocation4], 1 }

</bundles_post_ra>
